<compile_context>
chip_gen: v6e
topology: v6e:2x2x1
jax: 0.10.0
libtpu: 0.0.40
codegen_flags: <defaults>
</compile_context>

<pallas_src>
import jax
import jax.numpy as jnp
from jax.experimental import pallas as pl
from jax.experimental.pallas import tpu as pltpu


def _round_up(x, mult):
    return ((x + mult - 1) // mult) * mult


def _vmem_need(tm, ti, hidden, x_sz, w_sz):
    """Rough VMEM footprint for one grid step (double-buffered blocks + scratch)."""
    buffered = 2 * (tm * hidden * x_sz          # x tile
                    + hidden * 2 * ti * w_sz    # fused [gate|up] tile
                    + ti * hidden * w_sz        # down tile
                    + tm * hidden * x_sz)       # out tile
    scratch = tm * hidden * 4                   # f32 accumulator
    temps = tm * 2 * ti * 4 + tm * ti * 4 + tm * ti * x_sz  # gu/h f32 + h cast
    return buffered + scratch + temps


def _mlp_kernel(x_ref, wgu_ref, wd_ref, o_ref, acc_ref):
    # x_ref:   (tm, H)      token tile
    # wgu_ref: (H, 2*ti)    fused [gate | up] weight tile, (in, out) layout
    # wd_ref:  (ti, H)      down_proj weight tile, (in, out) layout
    # o_ref:   (tm, H)      output tile (revisited across the I axis)
    # acc_ref: (tm, H)      f32 accumulator scratch
    j = pl.program_id(1)

    @pl.when(j == 0)
    def _():
        acc_ref[...] = jnp.zeros_like(acc_ref)

    x = x_ref[...]
    # Single MXU matmul for gate+up: (tm, H) @ (H, 2*ti) -> (tm, 2*ti), f32 acc.
    gu = jnp.dot(x, wgu_ref[...], preferred_element_type=jnp.float32)
    ti = gu.shape[-1] // 2
    g = gu[:, :ti]                              # static, lane-aligned slices
    u = gu[:, ti:]
    h = (g * jax.nn.sigmoid(g)) * u             # SiLU(gate) * up, in f32

    # Partial down-projection for this I tile: (tm, ti) @ (ti, H) -> (tm, H).
    acc_ref[...] += jnp.dot(h.astype(x.dtype), wd_ref[...],
                            preferred_element_type=jnp.float32)

    @pl.when(j == pl.num_programs(1) - 1)
    def _():
        o_ref[...] = acc_ref[...].astype(o_ref.dtype)


def llama_mlp_pallas(x, w_gate, w_up, w_down, *, tm=None, ti=None):
    """SwiGLU MLP. Weights in PyTorch nn.Linear layout:
       w_gate, w_up: (intermediate, hidden); w_down: (hidden, intermediate).
       Note: in bf16 production weights, the h->bf16 cast before the down
       projection gives slightly lower precision than an all-f32 reference."""
    orig_shape = x.shape
    hidden = orig_shape[-1]
    inter = w_gate.shape[0]
    assert w_gate.shape == (inter, hidden)
    assert w_up.shape == (inter, hidden)
    assert w_down.shape == (hidden, inter)

    x2d = x.reshape(-1, hidden)
    m = x2d.shape[0]
    x_sz = jnp.dtype(x.dtype).itemsize
    w_sz = jnp.dtype(w_gate.dtype).itemsize

    try:
        vmem_cap = int(pltpu.get_tpu_info().vmem_capacity_bytes)
    except Exception:
        vmem_cap = 64 * 2 ** 20          # conservative fallback (covers v7x)
    vmem_budget = int(0.80 * vmem_cap)

    # --- Tile selection -----------------------------------------------------
    # Token tile: multiple of 8 sublanes; the tail is zero-padded, not asserted.
    tm_eff = min(_round_up(m, 8), _round_up(tm, 8) if tm else 512)
    # Intermediate tile: multiple of 128 lanes (MXU/lane friendly).
    ti_eff = min(_round_up(inter, 128), _round_up(ti, 128) if ti else 512)

    # Shrink tiles until the double-buffered footprint fits the VMEM budget.
    while (_vmem_need(tm_eff, ti_eff, hidden, x_sz, w_sz) > vmem_budget
           and ti_eff > 256):
        ti_eff -= 128
    while (_vmem_need(tm_eff, ti_eff, hidden, x_sz, w_sz) > vmem_budget
           and tm_eff > 64):
        tm_eff = _round_up(max(tm_eff // 2, 8), 8)

    m_pad = _round_up(m, tm_eff)
    i_pad = _round_up(inter, ti_eff)
    n_i = i_pad // ti_eff
    grid = (m_pad // tm_eff, n_i)

    # --- One-time re-layout (kernel does NO transposes) ---------------------
    # In a real model this is done once at weight-load time; under jit with
    # fixed weights it constant-folds.
    if m_pad != m:
        x2d = jnp.pad(x2d, ((0, m_pad - m), (0, 0)))
    wg_t = jnp.pad(w_gate.T, ((0, 0), (0, i_pad - inter)))       # (H, I_pad)
    wu_t = jnp.pad(w_up.T, ((0, 0), (0, i_pad - inter)))         # (H, I_pad)
    # Fused layout: tile j holds [gate tile j | up tile j] -> (H, 2*I_pad).
    wgu = jnp.concatenate(
        [wg_t.reshape(hidden, n_i, ti_eff), wu_t.reshape(hidden, n_i, ti_eff)],
        axis=-1).reshape(hidden, 2 * i_pad)
    wd_t = jnp.pad(w_down.T, ((0, i_pad - inter), (0, 0)))       # (I_pad, H)

    need = _vmem_need(tm_eff, ti_eff, hidden, x_sz, w_sz)
    vmem_limit = int(min(max(need * 1.2, 32 * 2 ** 20), 0.9 * vmem_cap))

    cost = pl.CostEstimate(
        flops=6 * m_pad * hidden * i_pad,             # 3 matmuls (2 fused + 1)
        transcendentals=m_pad * i_pad,                # sigmoid in SiLU
        bytes_accessed=int(
            2 * m_pad * hidden * x_sz                 # x in + out
            + grid[0] * 3 * hidden * i_pad * w_sz),   # weights, re-streamed per token tile
    )

    out = pl.pallas_call(
        _mlp_kernel,
        out_shape=jax.ShapeDtypeStruct((m_pad, hidden), x.dtype),
        grid_spec=pltpu.PrefetchScalarGridSpec(
            num_scalar_prefetch=0,
            grid=grid,
            in_specs=[
                pl.BlockSpec((tm_eff, hidden), lambda i, j: (i, 0)),      # x
                pl.BlockSpec((hidden, 2 * ti_eff), lambda i, j: (0, j)),  # [Wg|Wu]
                pl.BlockSpec((ti_eff, hidden), lambda i, j: (j, 0)),      # Wd
            ],
            out_specs=pl.BlockSpec((tm_eff, hidden), lambda i, j: (i, 0)),
            scratch_shapes=[pltpu.VMEM((tm_eff, hidden), jnp.float32)],
        ),
        compiler_params=pltpu.CompilerParams(
            dimension_semantics=("parallel", "arbitrary"),
            vmem_limit_bytes=vmem_limit,
        ),
        cost_estimate=cost,
    )(x2d, wgu, wd_t)

    if m_pad != m:
        out = out[:m]
    return out.reshape(orig_shape)


def _ref_mlp(x, w_gate, w_up, w_down):
    g = x @ w_gate.T
    u = x @ w_up.T
    return (jax.nn.silu(g) * u) @ w_down.T


if __name__ == "__main__":
    key = jax.random.PRNGKey(0)

    # --- Test 1: module-consistent small shape (batch=2, seq=8, hidden=32, inter=64)
    batch, seq, hidden, inter = 2, 8, 32, 64
    kx, kg, ku, kd, key = jax.random.split(key, 5)
    x = jax.random.normal(kx, (batch, seq, hidden), dtype=jnp.float32)
    w_gate = jax.random.normal(kg, (inter, hidden), dtype=jnp.float32) * 0.05
    w_up = jax.random.normal(ku, (inter, hidden), dtype=jnp.float32) * 0.05
    w_down = jax.random.normal(kd, (hidden, inter), dtype=jnp.float32) * 0.05

    y = jax.block_until_ready(llama_mlp_pallas(x, w_gate, w_up, w_down))
    y_ref = _ref_mlp(x, w_gate, w_up, w_down)
    assert y.shape == (batch, seq, hidden)
    assert jnp.allclose(y, y_ref, atol=1e-4, rtol=1e-4), "mismatch vs reference (test 1)"

    # --- Test 2: token-tail padding + multi-tile I accumulation (I divisible).
    hidden2, inter2, tokens2 = 128, 384, 20
    kx2, kg2, ku2, kd2, key = jax.random.split(key, 5)
    x2 = jax.random.normal(kx2, (tokens2, hidden2), dtype=jnp.float32)
    wg2 = jax.random.normal(kg2, (inter2, hidden2), dtype=jnp.float32) * 0.05
    wu2 = jax.random.normal(ku2, (inter2, hidden2), dtype=jnp.float32) * 0.05
    wd2 = jax.random.normal(kd2, (hidden2, inter2), dtype=jnp.float32) * 0.05
    y2 = jax.block_until_ready(llama_mlp_pallas(x2, wg2, wu2, wd2, ti=128))
    y2_ref = _ref_mlp(x2, wg2, wu2, wd2)
    assert y2.shape == (tokens2, hidden2)
    assert jnp.allclose(y2, y2_ref, atol=1e-4, rtol=1e-4), "mismatch vs reference (test 2)"

    # --- Test 3: intermediate dim NOT a multiple of the tile (I-padding path).
    hidden3, inter3, tokens3 = 64, 200, 12
    kx3, kg3, ku3, kd3, key = jax.random.split(key, 5)
    x3 = jax.random.normal(kx3, (tokens3, hidden3), dtype=jnp.float32)
    wg3 = jax.random.normal(kg3, (inter3, hidden3), dtype=jnp.float32) * 0.05
    wu3 = jax.random.normal(ku3, (inter3, hidden3), dtype=jnp.float32) * 0.05
    wd3 = jax.random.normal(kd3, (hidden3, inter3), dtype=jnp.float32) * 0.05
    y3 = jax.block_until_ready(llama_mlp_pallas(x3, wg3, wu3, wd3, ti=128))
    y3_ref = _ref_mlp(x3, wg3, wu3, wd3)
    assert y3.shape == (tokens3, hidden3)
    assert jnp.allclose(y3, y3_ref, atol=1e-4, rtol=1e-4), "mismatch vs reference (test 3)"

    print("KERNEL_OK")
</pallas_src>

<mosaic_0001>
module attributes {stable_mosaic.version = 11 : i64} {
  func.func @_mlp_kernel(%arg0: i32, %arg1: i32, %arg2: memref<16x32xf32, #tpu.memory_space<vmem>>, %arg3: memref<32x256xf32, #tpu.memory_space<vmem>>, %arg4: memref<128x32xf32, #tpu.memory_space<vmem>>, %arg5: memref<16x32xf32, #tpu.memory_space<vmem>>, %arg6: memref<16x32xf32, #tpu.memory_space<vmem>>) attributes {dimension_semantics = [#tpu.dimension_semantics<parallel>, #tpu.dimension_semantics<arbitrary>], iteration_bounds = array<i64: 1, 1>, scalar_prefetch = 0 : i64, scratch_operands = 1 : i64, tpu.core_type = #tpu.core_type<tc>, window_params = [{transform_indices = @transform_0, window_bounds = array<i64: 16, 32>}, {transform_indices = @transform_1, window_bounds = array<i64: 32, 256>}, {transform_indices = @transform_2, window_bounds = array<i64: 128, 32>}, {transform_indices = @transform_3, window_bounds = array<i64: 16, 32>}]} {
    %c0_i32 = arith.constant 0 : i32
    %0 = arith.cmpi eq, %arg1, %c0_i32 : i32
    %1 = arith.extui %0 : i1 to i32
    %c0_i32_0 = arith.constant 0 : i32
    %2 = arith.cmpi ne, %1, %c0_i32_0 : i32
    scf.if %2 {
      %cst_14 = arith.constant 0.000000e+00 : f32
      %23 = vector.broadcast %cst_14 : f32 to vector<16x32xf32>
      %c0_15 = arith.constant 0 : index
      %c0_16 = arith.constant 0 : index
      %24 = vector.load %arg6[%c0_15, %c0_16] : memref<16x32xf32, #tpu.memory_space<vmem>>, vector<16x32xf32>
      tpu.vector_store %arg6[%c0_15, %c0_16], %23 {strides = array<i32>} : memref<16x32xf32, #tpu.memory_space<vmem>>, vector<16x32xf32>,
    } else {
    }
    %c0 = arith.constant 0 : index
    %c0_1 = arith.constant 0 : index
    %3 = vector.load %arg2[%c0, %c0_1] : memref<16x32xf32, #tpu.memory_space<vmem>>, vector<16x32xf32>
    %c0_2 = arith.constant 0 : index
    %c0_3 = arith.constant 0 : index
    %4 = vector.load %arg3[%c0_2, %c0_3] : memref<32x256xf32, #tpu.memory_space<vmem>>, vector<32x256xf32>
    %cst = arith.constant dense<0.000000e+00> : vector<16x256xf32>
    %5 = tpu.matmul %3, %4, %cst {dimension_numbers = #tpu.dot_dimension_numbers<[1], [0], [0], [1], [0, 0, 1, 1], [], []>} : vector<16x32xf32>, vector<32x256xf32>, vector<16x256xf32> -> vector<16x256xf32>
    %6 = vector.extract_strided_slice %5 {offsets = [0, 0], sizes = [16, 128], strides = [1, 1]} : vector<16x256xf32> to vector<16x128xf32>
    %7 = vector.extract_strided_slice %5 {offsets = [0, 128], sizes = [16, 128], strides = [1, 1]} : vector<16x256xf32> to vector<16x128xf32>
    %8 = arith.negf %6 : vector<16x128xf32>
    %9 = math.exp %8 : vector<16x128xf32>
    %cst_4 = arith.constant 1.000000e+00 : f32
    %10 = vector.broadcast %cst_4 : f32 to vector<16x128xf32>
    %11 = arith.addf %10, %9 : vector<16x128xf32>
    %12 = arith.divf %10, %11 : vector<16x128xf32>
    %13 = arith.mulf %6, %12 : vector<16x128xf32>
    %14 = arith.mulf %13, %7 : vector<16x128xf32>
    %c0_5 = arith.constant 0 : index
    %c0_6 = arith.constant 0 : index
    %15 = vector.load %arg6[%c0_5, %c0_6] : memref<16x32xf32, #tpu.memory_space<vmem>>, vector<16x32xf32>
    %c0_7 = arith.constant 0 : index
    %c0_8 = arith.constant 0 : index
    %16 = vector.load %arg4[%c0_7, %c0_8] : memref<128x32xf32, #tpu.memory_space<vmem>>, vector<128x32xf32>
    %cst_9 = arith.constant dense<0.000000e+00> : vector<16x32xf32>
    %17 = tpu.matmul %14, %16, %cst_9 {dimension_numbers = #tpu.dot_dimension_numbers<[1], [0], [0], [1], [0, 0, 1, 1], [], []>} : vector<16x128xf32>, vector<128x32xf32>, vector<16x32xf32> -> vector<16x32xf32>
    %18 = arith.addf %15, %17 : vector<16x32xf32>
    %c0_10 = arith.constant 0 : index
    %c0_11 = arith.constant 0 : index
    %19 = vector.load %arg6[%c0_10, %c0_11] : memref<16x32xf32, #tpu.memory_space<vmem>>, vector<16x32xf32>
    tpu.vector_store %arg6[%c0_10, %c0_11], %18 {strides = array<i32>} : memref<16x32xf32, #tpu.memory_space<vmem>>, vector<16x32xf32>,
    %c0_i32_12 = arith.constant 0 : i32
    %20 = arith.cmpi eq, %arg1, %c0_i32_12 : i32
    %21 = arith.extui %20 : i1 to i32
    %c0_i32_13 = arith.constant 0 : i32
    %22 = arith.cmpi ne, %21, %c0_i32_13 : i32
    scf.if %22 {
      %c0_14 = arith.constant 0 : index
      %c0_15 = arith.constant 0 : index
      %23 = vector.load %arg6[%c0_14, %c0_15] : memref<16x32xf32, #tpu.memory_space<vmem>>, vector<16x32xf32>
      %c0_16 = arith.constant 0 : index
      %c0_17 = arith.constant 0 : index
      %24 = vector.load %arg5[%c0_16, %c0_17] : memref<16x32xf32, #tpu.memory_space<vmem>>, vector<16x32xf32>
      tpu.vector_store %arg5[%c0_16, %c0_17], %23 {strides = array<i32>} : memref<16x32xf32, #tpu.memory_space<vmem>>, vector<16x32xf32>,
    } else {
    }
    return
  }
  func.func @transform_0(%arg0: i32, %arg1: i32) -> (i32, i32) {
    %c0_i32 = arith.constant 0 : i32
    %c0_i32_0 = arith.constant 0 : i32
    return %arg0, %c0_i32 : i32, i32
  }
  func.func @transform_1(%arg0: i32, %arg1: i32) -> (i32, i32) {
    %c0_i32 = arith.constant 0 : i32
    %c0_i32_0 = arith.constant 0 : i32
    return %c0_i32, %arg1 : i32, i32
  }
  func.func @transform_2(%arg0: i32, %arg1: i32) -> (i32, i32) {
    %c0_i32 = arith.constant 0 : i32
    %c0_i32_0 = arith.constant 0 : i32
    return %arg1, %c0_i32 : i32, i32
  }
  func.func @transform_3(%arg0: i32, %arg1: i32) -> (i32, i32) {
    %c0_i32 = arith.constant 0 : i32
    %c0_i32_0 = arith.constant 0 : i32
    return %arg0, %c0_i32 : i32, i32
  }
}

</mosaic_0001>

<bundles_post_ra>
// kernel: tpu_custom_call.1
= control target key start
LH: loop header
LB: loop body
LE: loop exit
PB: predicated region body
PF: predicated region fallthrough
CT: control target
= control target key end

     0   :  { %vm19_vm0 = vcmask 261120   ;;  %v343_v4 = vmov 0.0   ;;  %s456_s0 = inlined_call_operand.vmem [shape: f32[16,32], index: 0, kind: input, shape index: {}]   ;;  %s457_s1 = inlined_call_operand.vmem [shape: f32[32,256], index: 1, kind: input, shape index: {}]   ;;  %s458_s2 = inlined_call_operand.vmem [shape: f32[128,32], index: 2, kind: input, shape index: {}]   ;;  %s459_s3 = inlined_call_operand.hbm [shape: f32[16,32], index: 3, kind: output, shape index: {}]  }
   0x1   :  { %v31_v0 = vld [vmem:[%s457_s1 + $0x38] sm:$0xff]  ;;  %v30_v1 = vld [vmem:[%s457_s1 + $0x30] sm:$0xff]  ;;  %v29_v2 = vld [vmem:[%s457_s1 + $0x28] sm:$0xff]  ;;  %20 = vst.msk [vmem:[#allocation2] sm:$0xff] %vm19_vm0, %v343_v4  ;;  %103 = vmatprep.mubr.f32.mxu0 %v343_v4 }
   0x2   :  { %63 = vmatprep.subr.mxu0 %v31_v0  ;;  %v28_v3 = vld [vmem:[%s457_s1 + $0x20] sm:$0xff]  ;;  %21 = vst.msk [vmem:[#allocation2 + $0x8] sm:$0xff] %vm19_vm0, %v343_v4  ;;  %v27_v5 = vld [vmem:[%s457_s1 + $0x18] sm:$0xff]  ;;  %v26_v6 = vld [vmem:[%s457_s1 + $0x10] sm:$0xff] }
   0x3   :  { %64 = vmatpush1.msra.mxu0 %v30_v1 }
   0x4   :  { %65 = vmatprep.subr.mxu0 %v29_v2 }
   0x5   :  { %8 = vsyncpa [#allocation4], 0  ;;  %66 = vmatpush1.msra.mxu0 %v28_v3  ;;  %v25_v7 = vld [vmem:[%s457_s1 + $0x8] sm:$0xff]  ;;  %v24_v8 = vld [vmem:[%s457_s1] sm:$0xff] }
   0x6   :  { %67 = vmatprep.subr.mxu0 %v27_v5  ;;  %v22_v9 = vld [vmem:[%s456_s0] sm:$0xff]  ;;  %v23_v10 = vld [vmem:[%s456_s0 + $0x8] sm:$0xff]  ;;  %v149_v11 = vld [vmem:[%s458_s2 + $0x78] sm:$0xff] }
   0x7   :  { %68 = vmatpush1.msra.mxu0 %v26_v6  ;;  %274 = vmatprep.subr.mxu1 %v149_v11  ;;  %v148_v12 = vld [vmem:[%s458_s2 + $0x70] sm:$0xff]  ;;  %v147_v13 = vld [vmem:[%s458_s2 + $0x68] sm:$0xff]  ;;  %v146_v14 = vld [vmem:[%s458_s2 + $0x60] sm:$0xff] }
   0x8   :  { %69 = vmatprep.subr.mxu0 %v25_v7  ;;  %275 = vmatpush3.msra.mxu1 %v149_v11  ;;  %v145_v15 = vld [vmem:[%s458_s2 + $0x58] sm:$0xff]  ;;  %v144_v16 = vld [vmem:[%s458_s2 + $0x50] sm:$0xff]  ;;  %v143_v17 = vld [vmem:[%s458_s2 + $0x48] sm:$0xff] }
   0x9   :  { %70 = vmatpush1.msra.mxu0 %v24_v8  ;;  %276 = vmatprep.subr.mxu1 %v148_v12  ;;  %v142_v18 = vld [vmem:[%s458_s2 + $0x40] sm:$0xff]  ;;  %v141_v19 = vld [vmem:[%s458_s2 + $0x38] sm:$0xff]  ;;  %v140_v20 = vld [vmem:[%s458_s2 + $0x30] sm:$0xff] }
   0xa   :  { %252 = vmatmul.mubr.msk.f32.vlgmr.msra.gmra.mxu0 %vm19_vm0, %v22_v9  ;;  %277 = vmatpush3.msra.mxu1 %v148_v12  ;;  %v139_v21 = vld [vmem:[%s458_s2 + $0x28] sm:$0xff]  ;;  %v138_v22 = vld [vmem:[%s458_s2 + $0x20] sm:$0xff]  ;;  %v137_v23 = vld [vmem:[%s458_s2 + $0x18] sm:$0xff] }
   0xb   :  { %109 = vmatprep.mubr.f32.mxu0 %v343_v4  ;;  %278 = vmatprep.subr.mxu1 %v147_v13  ;;  %v136_v24 = vld [vmem:[%s458_s2 + $0x10] sm:$0xff]  ;;  %v135_v25 = vld [vmem:[%s458_s2 + $0x8] sm:$0xff]  ;;  %v134_v26 = vld [vmem:[%s458_s2] sm:$0xff]  ;;  %s344_s2 = smov [#allocation3]  }
   0xc   :  { %279 = vmatpush3.msra.mxu1 %v147_v13  ;;  %v133_v43 = vld [vmem:[#allocation2 + $0x8] sm:$0xff]  ;;  %v132_v45 = vld [vmem:[#allocation2] sm:$0xff]  ;;  %s241_s7 = sshll.u32 %s344_s2, 4  ;;  %s242_s7 = int_to_ptr.vmem [resolvable:$true] %s241_s7 }
   0xd   :  { %280 = vmatprep.subr.mxu1 %v146_v14  ;;  %s321_s8 = scalar_lea.vmem %s242_s7, 256  ;;  %p326_p1 = scmp.lt.s32.totalorder %s242_s7, %s242_s7 }
   0xe   :  { %253 = vmatmul.mubr.msk.f32.gmra.mxu0 %vm19_vm0, %v23_v10  ;;  %281 = vmatpush3.msra.mxu1 %v146_v14  ;;  %p322_p0 = scmp.ne.s32.totalorder %s242_s7, %s321_s8  ;;  %p327_p2 = scmp.lt.s32.totalorder %s321_s8, %s321_s8 }
   0xf   :  { %282 = vmatprep.subr.mxu1 %v145_v15 }
  0x10   :  { %283 = vmatpush3.msra.mxu1 %v145_v15  ;;  %p328_p3 = por %p327_p2, %p326_p1 }
  0x11   :  { %284 = vmatprep.subr.mxu1 %v144_v16 }
  0x12   :  { %285 = vmatpush3.msra.mxu1 %v144_v16  ;;  %p329_p4 = pnand %p328_p3, %p322_p0 }
  0x13   :  { %286 = vmatprep.subr.mxu1 %v143_v17 }
  0x14   :  { %287 = vmatpush3.msra.mxu1 %v143_v17 }
  0x15   :  { %288 = vmatprep.subr.mxu1 %v142_v18 }
  0x16   :  { %289 = vmatpush3.msra.mxu1 %v142_v18 }
  0x17   :  { %290 = vmatprep.subr.mxu1 %v141_v19 }
  0x18   :  { %291 = vmatpush3.msra.mxu1 %v141_v19 }
  0x19   :  { %292 = vmatprep.subr.mxu1 %v140_v20 }
  0x1a   :  { %293 = vmatpush3.msra.mxu1 %v140_v20 }
  0x1b   :  { %294 = vmatprep.subr.mxu1 %v139_v21 }
  0x1c   :  { %295 = vmatpush3.msra.mxu1 %v139_v21 }
  0x1d   :  { %296 = vmatprep.subr.mxu1 %v138_v22 }
  0x1e   :  { %297 = vmatpush3.msra.mxu1 %v138_v22 }
  0x1f   :  { %298 = vmatprep.subr.mxu1 %v137_v23 }
  0x20   :  { %299 = vmatpush3.msra.mxu1 %v137_v23 }
  0x21   :  { %300 = vmatprep.subr.mxu1 %v136_v24 }
  0x22   :  { %301 = vmatpush3.msra.mxu1 %v136_v24 }
  0x23   :  { %302 = vmatprep.subr.mxu1 %v135_v25 }
  0x24   :  { %303 = vmatpush3.msra.mxu1 %v135_v25 }
  0x25   :  { %304 = vmatprep.subr.mxu1 %v134_v26 }
  0x26   :  { %305 = vmatpush3.msra.mxu1 %v134_v26 }
  0xca   :  { %v105_v27 = vpop.f32.mrf.mxu0 }
  0xcb   :  { %v254_v28 = vmul.f32 -1.442695, %v105_v27 }
  0xcc   :  { %v107_v29 = vpop.f32.mrf.mxu0 }
  0xcd   :  { %313 = vpow2.f32 %v254_v28 }
  0xce   :  { %v111_v30 = vpop.f32.mrf.mxu0 }
  0xcf   :  { %v255_v31 = vmul.f32 -1.442695, %v111_v30 }
  0xd0   :  { %v113_v41 = vpop.f32.mrf.mxu0 }
  0xd1   :  { %315 = vpow2.f32 %v255_v31 }
  0xda   :  { %v314_v32 = vpop.eup %313 }
  0xdb   :  { %v122_v33 = vadd.f32 1.0, %v314_v32 }
  0xdd   :  { %317 = vrcp.f32 %v122_v33 }
  0xde   :  { %v316_v34 = vpop.eup %315 }
  0xdf   :  { %v123_v35 = vadd.f32 1.0, %v316_v34 }
  0xe1   :  { %319 = vrcp.f32 %v123_v35 }
  0xea   :  { %v318_v36 = vpop.eup %317 }
  0xeb   :  { %v128_v37 = vmul.f32 %v318_v36, %v105_v27 }
  0xed   :  { %v130_v38 = vmul.f32 %v128_v37, %v107_v29 }
  0xee   :  { %v320_v39 = vpop.eup %319 }
  0xef   :  { %v129_v40 = vmul.f32 %v320_v39, %v111_v30  ;;  %306 = vmatprep.mubr.f32.mxu1 %v130_v38 }
  0xf1   :  { %v131_v42 = vmul.f32 %v129_v40, %v113_v41 }
  0xf3   :  { %307 = vmatmul.mubr.f32.vlgmr.msra.gmra.mxu1 %v131_v42 }
 0x1b3   :  { %v308_v44 = vpop.f32.mrf.mxu1 }
 0x1b4   :  { %v226_v46 = vadd.f32 %v308_v44, %v133_v43 }
 0x1b5   :  { %v216_v47 = vpop.f32.mrf.mxu1 }
 0x1b6   :  { %228 = vst.msk [vmem:[#allocation2 + $0x8] sm:$0xff] %vm19_vm0, %v226_v46  ;;  %v225_v48 = vadd.f32 %v216_v47, %v132_v45 }
 0x1b8   :  { %227 = vst.msk [vmem:[#allocation2] sm:$0xff] %vm19_vm0, %v225_v48 }
 0x1bd   :  { %v233_v49 = vld [vmem:[#allocation2 + $0x8] sm:$0xff] }
 0x1be   :  { %235 = vst.msk [vmem:[#allocation3 + $0x8] sm:$0xff] %vm19_vm0, %v233_v49 }
 0x1bf   :  { %v232_v50 = vld [vmem:[#allocation2] sm:$0xff] }
 0x1c0   :  { %234 = vst.msk [vmem:[#allocation3] sm:$0xff] %vm19_vm0, %v232_v50 }
 0x1c1   :  { %332 = shalt.err (!%p329_p4)
}
 0x1c2   :  { %s345_s9 = smov 128   ;;  %s346_s0 = smov 8  }
 0x1c3   :  { %247 = dma.vmem_to_hbm [thread:$0]  %s242_s7, 256, %s459_s3, [#allocation4], %s345_s9, %s345_s9, %s346_s0  }
 0x1c4   :  { %341 = dma.done.wait [#allocation4], 256  }
 0x1c5   :  { %342 = vsyncadd [#allocation4], 4294967040 }
 0x1c6   :  { %251 = vsyncpa [#allocation4], 1 }

</bundles_post_ra>
